<compile_context>
chip_gen: v7x
topology: tpu7x:2x2x1
jax: 0.10.0
libtpu: 0.0.40
codegen_flags: <defaults>
</compile_context>

<pallas_src>
import functools

import jax
import jax.numpy as jnp
from jax.experimental import pallas as pl
from jax.experimental.pallas import tpu as pltpu


def _round_up(x, m):
    return (x + m - 1) // m * m


def _gru_decoder_kernel(emb_ref, wih_ref, whh_ref, bx_ref, bhn_ref,
                        wout_ref, bout_ref,
                        out_ref, hn_ref,
                        gx_scratch, h_all_scratch, *, unroll):
    T, Bp, H = emb_ref.shape
    Gp = wih_ref.shape[1]          # packed gate width: round_up(3H, 128)
    Op = out_ref.shape[2]

    # ---- hoisted input projection: one MXU matmul for the whole sequence ----
    # output = F.relu(embedded);  gx_t = relu(x_t) @ W_ih^T + b_ih (+ b_hh[r,z])
    x_all = jnp.maximum(emb_ref[...], 0.0).reshape(T * Bp, H)
    gx_all = jnp.dot(x_all, wih_ref[...], preferred_element_type=jnp.float32)
    gx_scratch[...] = (gx_all + bx_ref[...]).reshape(T, Bp, Gp)

    whh = whh_ref[...]             # (H, Gp), resident across the loop
    bhn = bhn_ref[...]             # (1, H), n-gate hidden bias (must stay per-step)

    # ---- serial recurrence: only h @ W_hh + gate math per step ----
    def step(t, h):
        gx = gx_scratch[t]                                             # (Bp, Gp)
        gh = jnp.dot(h, whh, preferred_element_type=jnp.float32)       # (Bp, Gp)
        # PyTorch gate order [r, z, n], packed in lanes [0:H | H:2H | 2H:3H].
        rz = jax.nn.sigmoid(gx[:, 0:2 * H] + gh[:, 0:2 * H])           # fused r,z
        r = rz[:, 0:H]
        z = rz[:, H:2 * H]
        n = jnp.tanh(gx[:, 2 * H:3 * H] + r * (gh[:, 2 * H:3 * H] + bhn))
        h_new = (1.0 - z) * n + z * h
        h_all_scratch[t] = h_new
        return h_new

    h0 = jnp.zeros((Bp, H), jnp.float32)           # hidden = None -> zeros
    h_final = jax.lax.fori_loop(0, T, step, h0, unroll=unroll)
    hn_ref[0] = h_final

    # ---- hoisted output projection: one (T*Bp, H) x (H, Op) matmul ----
    h_flat = h_all_scratch[...].reshape(T * Bp, H)
    out_all = jnp.dot(h_flat, wout_ref[...], preferred_element_type=jnp.float32)
    out_ref[...] = (out_all + bout_ref[...]).reshape(T, Bp, Op)


def prepare_params(params):
    """One-time weight prep (hoisted out of the per-call forward).

    PyTorch GRU weights (3H, H) are transposed and kept gate-packed in the last
    dim: columns [r | z | n | zero-pad] up to Gp = round_up(3H, 128).
    b_hh for the r/z gates is folded into the input-side bias.
    """
    emb = params["embedding"].astype(jnp.float32)                  # (O, H)
    O, H = emb.shape
    Gp = _round_up(3 * H, 128)
    Op = _round_up(max(O, 128), 128)                               # lane-dense logits

    wih_p = jnp.pad(params["w_ih"].T.astype(jnp.float32), ((0, 0), (0, Gp - 3 * H)))
    whh_p = jnp.pad(params["w_hh"].T.astype(jnp.float32), ((0, 0), (0, Gp - 3 * H)))

    b_ih = params["b_ih"].astype(jnp.float32)
    b_hh = params["b_hh"].astype(jnp.float32)
    bx = jnp.concatenate([b_ih[:2 * H] + b_hh[:2 * H], b_ih[2 * H:]])   # fold r,z
    bx_p = jnp.pad(bx, (0, Gp - 3 * H)).reshape(1, Gp)
    bhn = b_hh[2 * H:].reshape(1, H)                                    # n-gate only

    wout_p = jnp.pad(params["w_out"].T.astype(jnp.float32), ((0, 0), (0, Op - O)))
    bout_p = jnp.pad(params["b_out"].astype(jnp.float32), (0, Op - O)).reshape(1, Op)

    arrays = {"emb": emb, "wih": wih_p, "whh": whh_p, "bx": bx_p,
              "bhn": bhn, "wout": wout_p, "bout": bout_p}
    return {"arrays": arrays, "H": int(H), "O": int(O)}


@functools.partial(jax.jit, static_argnums=(2, 3))
def _forward_jit(tokens, arrs, H, O):
    emb_table = arrs["emb"]
    wih, whh = arrs["wih"], arrs["whh"]
    bx, bhn = arrs["bx"], arrs["bhn"]
    wout, bout = arrs["wout"], arrs["bout"]

    Gp = wih.shape[1]
    Op = wout.shape[1]
    B, T = tokens.shape
    Bp = _round_up(max(B, 8), 8)                   # f32 sublanes

    # ---- glue: embedding gather (data-dependent), batch pad, time-major ----
    embedded = emb_table[tokens]                                   # (B, T, H)
    embedded = jnp.pad(embedded, ((0, Bp - B), (0, 0), (0, 0)))
    embedded_t = jnp.transpose(embedded, (1, 0, 2))                # (T, Bp, H)

    grid_spec = pltpu.PrefetchScalarGridSpec(
        num_scalar_prefetch=0,
        grid=(1,),                                                 # single step
        in_specs=[
            pl.BlockSpec((T, Bp, H), lambda i: (0, 0, 0)),         # embedded (all t)
            pl.BlockSpec((H, Gp), lambda i: (0, 0)),               # W_ih^T packed
            pl.BlockSpec((H, Gp), lambda i: (0, 0)),               # W_hh^T packed
            pl.BlockSpec((1, Gp), lambda i: (0, 0)),               # b_ih + b_hh[r,z]
            pl.BlockSpec((1, H), lambda i: (0, 0)),                # b_hh[n]
            pl.BlockSpec((H, Op), lambda i: (0, 0)),               # W_out^T
            pl.BlockSpec((1, Op), lambda i: (0, 0)),               # b_out
        ],
        out_specs=[
            pl.BlockSpec((T, Bp, Op), lambda i: (0, 0, 0)),        # all-step logits
            pl.BlockSpec((1, Bp, H), lambda i: (0, 0, 0)),         # final hidden
        ],
        scratch_shapes=[
            pltpu.VMEM((T, Bp, Gp), jnp.float32),                  # precomputed gx
            pltpu.VMEM((T, Bp, H), jnp.float32),                   # all hidden states
        ],
    )

    # Advisory cost hint so XLA overlaps the gather/transpose glue around us.
    flops = 2 * T * Bp * H * (2 * Gp + Op)
    transcendentals = T * Bp * 3 * H
    bytes_accessed = 4 * (T * Bp * H + 2 * H * Gp + Gp + H + H * Op + Op
                          + T * Bp * Op + Bp * H)
    cost = pl.CostEstimate(flops=flops, transcendentals=transcendentals,
                           bytes_accessed=bytes_accessed)

    kernel = functools.partial(_gru_decoder_kernel, unroll=8)      # capped unroll
    out_t, h_n = pl.pallas_call(
        kernel,
        out_shape=(
            jax.ShapeDtypeStruct((T, Bp, Op), jnp.float32),
            jax.ShapeDtypeStruct((1, Bp, H), jnp.float32),
        ),
        grid_spec=grid_spec,
        compiler_params=pltpu.CompilerParams(
            dimension_semantics=("arbitrary",)),
        cost_estimate=cost,
    )(embedded_t, wih, whh, bx, bhn, wout, bout)

    # Padded batch rows compute garbage gates -> keep these slices.
    output = jnp.transpose(out_t[:, :B, :O], (1, 0, 2))            # (B, T, O)
    hidden = h_n[:, :B, :]                                         # (1, B, H)
    return output, hidden


def decoder_rnn_forward(tokens, prep):
    """tokens: (B, T) int32; prep from prepare_params().
    Returns (output (B, T, O), hidden (1, B, H))."""
    return _forward_jit(tokens, prep["arrays"], prep["H"], prep["O"])


def init_params(key, hidden_size, output_size):
    """Deterministic synthetic parameters mirroring the PyTorch module shapes."""
    H, O = hidden_size, output_size
    k = jax.random.split(key, 8)
    bound = 1.0 / jnp.sqrt(jnp.float32(H))
    u = lambda kk, shape: jax.random.uniform(kk, shape, jnp.float32, -bound, bound)
    return {
        "embedding": jax.random.normal(k[0], (O, H), jnp.float32),  # nn.Embedding
        "w_ih": u(k[1], (3 * H, H)),                                # nn.GRU
        "w_hh": u(k[2], (3 * H, H)),
        "b_ih": u(k[3], (3 * H,)),
        "b_hh": u(k[4], (3 * H,)),
        "w_out": u(k[5], (O, H)),                                   # nn.Linear
        "b_out": u(k[6], (O,)),
    }


def _reference_forward(tokens, params):
    """Pure-JAX reference for correctness checking (PyTorch GRU semantics)."""
    emb = params["embedding"][tokens]            # (B, T, H)
    x_seq = jnp.maximum(emb, 0.0)
    B, T, H = x_seq.shape
    wih_t, whh_t = params["w_ih"].T, params["w_hh"].T
    h = jnp.zeros((B, H), jnp.float32)
    outs = []
    for t in range(T):
        x = x_seq[:, t, :]
        gx = x @ wih_t + params["b_ih"]
        gh = h @ whh_t + params["b_hh"]
        r = jax.nn.sigmoid(gx[:, 0:H] + gh[:, 0:H])
        z = jax.nn.sigmoid(gx[:, H:2 * H] + gh[:, H:2 * H])
        n = jnp.tanh(gx[:, 2 * H:] + r * gh[:, 2 * H:])
        h = (1.0 - z) * n + z * h
        outs.append(h @ params["w_out"].T + params["b_out"])
    return jnp.stack(outs, axis=1), h[None]


if __name__ == "__main__":
    hidden_size = 32
    output_size = 40      # vocab size
    batch, seq = 2, 8

    key = jax.random.PRNGKey(0)
    pkey, tkey = jax.random.split(key)
    params = init_params(pkey, hidden_size, output_size)
    tokens = jax.random.randint(tkey, (batch, seq), 0, output_size, dtype=jnp.int32)

    prep = prepare_params(params)                 # one-time weight prep (hoisted)
    output, hidden = decoder_rnn_forward(tokens, prep)
    output, hidden = jax.block_until_ready((output, hidden))

    ref_out, ref_hidden = _reference_forward(tokens, params)
    assert output.shape == (batch, seq, output_size)
    assert hidden.shape == (1, batch, hidden_size)
    assert jnp.allclose(output, ref_out, atol=1e-5, rtol=1e-5)
    assert jnp.allclose(hidden, ref_hidden, atol=1e-5, rtol=1e-5)

    print("KERNEL_OK")
</pallas_src>

<mosaic_0001>
module attributes {stable_mosaic.version = 11 : i64} {
  func.func @_gru_decoder_kernel(%arg0: i32, %arg1: memref<8x8x32xf32, #tpu.memory_space<vmem>>, %arg2: memref<32x128xf32, #tpu.memory_space<vmem>>, %arg3: memref<32x128xf32, #tpu.memory_space<vmem>>, %arg4: memref<1x128xf32, #tpu.memory_space<vmem>>, %arg5: memref<1x32xf32, #tpu.memory_space<vmem>>, %arg6: memref<32x128xf32, #tpu.memory_space<vmem>>, %arg7: memref<1x128xf32, #tpu.memory_space<vmem>>, %arg8: memref<8x8x128xf32, #tpu.memory_space<vmem>>, %arg9: memref<1x8x32xf32, #tpu.memory_space<vmem>>, %arg10: memref<8x8x128xf32, #tpu.memory_space<vmem>>, %arg11: memref<8x8x32xf32, #tpu.memory_space<vmem>>) attributes {dimension_semantics = [#tpu.dimension_semantics<arbitrary>], iteration_bounds = array<i64: 1>, scalar_prefetch = 0 : i64, scratch_operands = 2 : i64, tpu.core_type = #tpu.core_type<tc>, window_params = [{pipeline_mode = #tpu.pipeline_mode<synchronous>, transform_indices = @transform_0, window_bounds = array<i64: 8, 8, 32>}, {pipeline_mode = #tpu.pipeline_mode<synchronous>, transform_indices = @transform_1, window_bounds = array<i64: 32, 128>}, {pipeline_mode = #tpu.pipeline_mode<synchronous>, transform_indices = @transform_2, window_bounds = array<i64: 32, 128>}, {pipeline_mode = #tpu.pipeline_mode<synchronous>, transform_indices = @transform_3, window_bounds = array<i64: 1, 128>}, {pipeline_mode = #tpu.pipeline_mode<synchronous>, transform_indices = @transform_4, window_bounds = array<i64: 1, 32>}, {pipeline_mode = #tpu.pipeline_mode<synchronous>, transform_indices = @transform_5, window_bounds = array<i64: 32, 128>}, {pipeline_mode = #tpu.pipeline_mode<synchronous>, transform_indices = @transform_6, window_bounds = array<i64: 1, 128>}, {pipeline_mode = #tpu.pipeline_mode<synchronous>, transform_indices = @transform_7, window_bounds = array<i64: 8, 8, 128>}, {pipeline_mode = #tpu.pipeline_mode<synchronous>, transform_indices = @transform_8, window_bounds = array<i64: 1, 8, 32>}]} {
    %c0 = arith.constant 0 : index
    %c0_0 = arith.constant 0 : index
    %c0_1 = arith.constant 0 : index
    %0 = vector.load %arg1[%c0, %c0_0, %c0_1] : memref<8x8x32xf32, #tpu.memory_space<vmem>>, vector<8x8x32xf32>
    %cst = arith.constant 0.000000e+00 : f32
    %1 = vector.broadcast %cst : f32 to vector<8x8x32xf32>
    %2 = arith.maximumf %0, %1 : vector<8x8x32xf32>
    %3 = vector.shape_cast %2 : vector<8x8x32xf32> to vector<64x32xf32>
    %c0_2 = arith.constant 0 : index
    %c0_3 = arith.constant 0 : index
    %4 = vector.load %arg2[%c0_2, %c0_3] : memref<32x128xf32, #tpu.memory_space<vmem>>, vector<32x128xf32>
    %cst_4 = arith.constant dense<0.000000e+00> : vector<64x128xf32>
    %5 = tpu.matmul %3, %4, %cst_4 {dimension_numbers = #tpu.dot_dimension_numbers<[1], [0], [0], [1], [0, 0, 1, 1], [], []>} : vector<64x32xf32>, vector<32x128xf32>, vector<64x128xf32> -> vector<64x128xf32>
    %c0_5 = arith.constant 0 : index
    %c0_6 = arith.constant 0 : index
    %6 = vector.load %arg4[%c0_5, %c0_6] : memref<1x128xf32, #tpu.memory_space<vmem>>, vector<1x128xf32>
    %7 = vector.broadcast %6 : vector<1x128xf32> to vector<64x128xf32>
    %8 = arith.addf %5, %7 : vector<64x128xf32>
    %9 = vector.shape_cast %8 : vector<64x128xf32> to vector<8x8x128xf32>
    %c0_7 = arith.constant 0 : index
    %c0_8 = arith.constant 0 : index
    %c0_9 = arith.constant 0 : index
    %10 = vector.load %arg10[%c0_7, %c0_8, %c0_9] : memref<8x8x128xf32, #tpu.memory_space<vmem>>, vector<8x8x128xf32>
    tpu.vector_store %arg10[%c0_7, %c0_8, %c0_9], %9 {strides = array<i32>} : memref<8x8x128xf32, #tpu.memory_space<vmem>>, vector<8x8x128xf32>,
    %c0_10 = arith.constant 0 : index
    %c0_11 = arith.constant 0 : index
    %11 = vector.load %arg3[%c0_10, %c0_11] : memref<32x128xf32, #tpu.memory_space<vmem>>, vector<32x128xf32>
    %c0_12 = arith.constant 0 : index
    %c0_13 = arith.constant 0 : index
    %12 = vector.load %arg5[%c0_12, %c0_13] : memref<1x32xf32, #tpu.memory_space<vmem>>, vector<1x32xf32>
    %cst_14 = arith.constant 0.000000e+00 : f32
    %13 = vector.broadcast %cst_14 : f32 to vector<8x32xf32>
    %c0_i32 = arith.constant 0 : i32
    %14 = arith.index_cast %c0_i32 : i32 to index
    %c0_15 = arith.constant 0 : index
    %c0_16 = arith.constant 0 : index
    %15 = vector.load %arg10[%14, %c0_15, %c0_16] : memref<8x8x128xf32, #tpu.memory_space<vmem>>, vector<1x8x128xf32>
    %16 = vector.shape_cast %15 : vector<1x8x128xf32> to vector<8x128xf32>
    %cst_17 = arith.constant dense<0.000000e+00> : vector<8x128xf32>
    %17 = tpu.matmul %13, %11, %cst_17 {dimension_numbers = #tpu.dot_dimension_numbers<[1], [0], [0], [1], [0, 0, 1, 1], [], []>} : vector<8x32xf32>, vector<32x128xf32>, vector<8x128xf32> -> vector<8x128xf32>
    %18 = vector.extract_strided_slice %16 {offsets = [0, 0], sizes = [8, 64], strides = [1, 1]} : vector<8x128xf32> to vector<8x64xf32>
    %19 = vector.extract_strided_slice %17 {offsets = [0, 0], sizes = [8, 64], strides = [1, 1]} : vector<8x128xf32> to vector<8x64xf32>
    %20 = arith.addf %18, %19 : vector<8x64xf32>
    %21 = arith.negf %20 : vector<8x64xf32>
    %22 = math.exp %21 : vector<8x64xf32>
    %cst_18 = arith.constant 1.000000e+00 : f32
    %23 = vector.broadcast %cst_18 : f32 to vector<8x64xf32>
    %24 = arith.addf %23, %22 : vector<8x64xf32>
    %25 = arith.divf %23, %24 : vector<8x64xf32>
    %26 = vector.extract_strided_slice %25 {offsets = [0, 0], sizes = [8, 32], strides = [1, 1]} : vector<8x64xf32> to vector<8x32xf32>
    %27 = vector.extract_strided_slice %25 {offsets = [0, 32], sizes = [8, 32], strides = [1, 1]} : vector<8x64xf32> to vector<8x32xf32>
    %28 = vector.extract_strided_slice %16 {offsets = [0, 64], sizes = [8, 32], strides = [1, 1]} : vector<8x128xf32> to vector<8x32xf32>
    %29 = vector.extract_strided_slice %17 {offsets = [0, 64], sizes = [8, 32], strides = [1, 1]} : vector<8x128xf32> to vector<8x32xf32>
    %30 = vector.broadcast %12 : vector<1x32xf32> to vector<8x32xf32>
    %31 = arith.addf %29, %30 : vector<8x32xf32>
    %32 = arith.mulf %26, %31 : vector<8x32xf32>
    %33 = arith.addf %28, %32 : vector<8x32xf32>
    %34 = math.tanh %33 : vector<8x32xf32>
    %cst_19 = arith.constant 1.000000e+00 : f32
    %35 = vector.broadcast %cst_19 : f32 to vector<8x32xf32>
    %36 = arith.subf %35, %27 : vector<8x32xf32>
    %37 = arith.mulf %36, %34 : vector<8x32xf32>
    %38 = arith.mulf %27, %13 : vector<8x32xf32>
    %39 = arith.addf %37, %38 : vector<8x32xf32>
    %40 = arith.index_cast %c0_i32 : i32 to index
    %c0_20 = arith.constant 0 : index
    %c0_21 = arith.constant 0 : index
    %41 = vector.load %arg11[%40, %c0_20, %c0_21] : memref<8x8x32xf32, #tpu.memory_space<vmem>>, vector<1x8x32xf32>
    %42 = vector.shape_cast %41 : vector<1x8x32xf32> to vector<8x32xf32>
    %43 = vector.shape_cast %39 : vector<8x32xf32> to vector<1x8x32xf32>
    tpu.vector_store %arg11[%40, %c0_20, %c0_21], %43 {strides = array<i32>} : memref<8x8x32xf32, #tpu.memory_space<vmem>>, vector<1x8x32xf32>,
    %c1_i32 = arith.constant 1 : i32
    %44 = arith.index_cast %c1_i32 : i32 to index
    %c0_22 = arith.constant 0 : index
    %c0_23 = arith.constant 0 : index
    %45 = vector.load %arg10[%44, %c0_22, %c0_23] : memref<8x8x128xf32, #tpu.memory_space<vmem>>, vector<1x8x128xf32>
    %46 = vector.shape_cast %45 : vector<1x8x128xf32> to vector<8x128xf32>
    %cst_24 = arith.constant dense<0.000000e+00> : vector<8x128xf32>
    %47 = tpu.matmul %39, %11, %cst_24 {dimension_numbers = #tpu.dot_dimension_numbers<[1], [0], [0], [1], [0, 0, 1, 1], [], []>} : vector<8x32xf32>, vector<32x128xf32>, vector<8x128xf32> -> vector<8x128xf32>
    %48 = vector.extract_strided_slice %46 {offsets = [0, 0], sizes = [8, 64], strides = [1, 1]} : vector<8x128xf32> to vector<8x64xf32>
    %49 = vector.extract_strided_slice %47 {offsets = [0, 0], sizes = [8, 64], strides = [1, 1]} : vector<8x128xf32> to vector<8x64xf32>
    %50 = arith.addf %48, %49 : vector<8x64xf32>
    %51 = arith.negf %50 : vector<8x64xf32>
    %52 = math.exp %51 : vector<8x64xf32>
    %cst_25 = arith.constant 1.000000e+00 : f32
    %53 = vector.broadcast %cst_25 : f32 to vector<8x64xf32>
    %54 = arith.addf %53, %52 : vector<8x64xf32>
    %55 = arith.divf %53, %54 : vector<8x64xf32>
    %56 = vector.extract_strided_slice %55 {offsets = [0, 0], sizes = [8, 32], strides = [1, 1]} : vector<8x64xf32> to vector<8x32xf32>
    %57 = vector.extract_strided_slice %55 {offsets = [0, 32], sizes = [8, 32], strides = [1, 1]} : vector<8x64xf32> to vector<8x32xf32>
    %58 = vector.extract_strided_slice %46 {offsets = [0, 64], sizes = [8, 32], strides = [1, 1]} : vector<8x128xf32> to vector<8x32xf32>
    %59 = vector.extract_strided_slice %47 {offsets = [0, 64], sizes = [8, 32], strides = [1, 1]} : vector<8x128xf32> to vector<8x32xf32>
    %60 = vector.broadcast %12 : vector<1x32xf32> to vector<8x32xf32>
    %61 = arith.addf %59, %60 : vector<8x32xf32>
    %62 = arith.mulf %56, %61 : vector<8x32xf32>
    %63 = arith.addf %58, %62 : vector<8x32xf32>
    %64 = math.tanh %63 : vector<8x32xf32>
    %cst_26 = arith.constant 1.000000e+00 : f32
    %65 = vector.broadcast %cst_26 : f32 to vector<8x32xf32>
    %66 = arith.subf %65, %57 : vector<8x32xf32>
    %67 = arith.mulf %66, %64 : vector<8x32xf32>
    %68 = arith.mulf %57, %39 : vector<8x32xf32>
    %69 = arith.addf %67, %68 : vector<8x32xf32>
    %70 = arith.index_cast %c1_i32 : i32 to index
    %c0_27 = arith.constant 0 : index
    %c0_28 = arith.constant 0 : index
    %71 = vector.load %arg11[%70, %c0_27, %c0_28] : memref<8x8x32xf32, #tpu.memory_space<vmem>>, vector<1x8x32xf32>
    %72 = vector.shape_cast %71 : vector<1x8x32xf32> to vector<8x32xf32>
    %73 = vector.shape_cast %69 : vector<8x32xf32> to vector<1x8x32xf32>
    tpu.vector_store %arg11[%70, %c0_27, %c0_28], %73 {strides = array<i32>} : memref<8x8x32xf32, #tpu.memory_space<vmem>>, vector<1x8x32xf32>,
    %c2_i32 = arith.constant 2 : i32
    %74 = arith.index_cast %c2_i32 : i32 to index
    %c0_29 = arith.constant 0 : index
    %c0_30 = arith.constant 0 : index
    %75 = vector.load %arg10[%74, %c0_29, %c0_30] : memref<8x8x128xf32, #tpu.memory_space<vmem>>, vector<1x8x128xf32>
    %76 = vector.shape_cast %75 : vector<1x8x128xf32> to vector<8x128xf32>
    %cst_31 = arith.constant dense<0.000000e+00> : vector<8x128xf32>
    %77 = tpu.matmul %69, %11, %cst_31 {dimension_numbers = #tpu.dot_dimension_numbers<[1], [0], [0], [1], [0, 0, 1, 1], [], []>} : vector<8x32xf32>, vector<32x128xf32>, vector<8x128xf32> -> vector<8x128xf32>
    %78 = vector.extract_strided_slice %76 {offsets = [0, 0], sizes = [8, 64], strides = [1, 1]} : vector<8x128xf32> to vector<8x64xf32>
    %79 = vector.extract_strided_slice %77 {offsets = [0, 0], sizes = [8, 64], strides = [1, 1]} : vector<8x128xf32> to vector<8x64xf32>
    %80 = arith.addf %78, %79 : vector<8x64xf32>
    %81 = arith.negf %80 : vector<8x64xf32>
    %82 = math.exp %81 : vector<8x64xf32>
    %cst_32 = arith.constant 1.000000e+00 : f32
    %83 = vector.broadcast %cst_32 : f32 to vector<8x64xf32>
    %84 = arith.addf %83, %82 : vector<8x64xf32>
    %85 = arith.divf %83, %84 : vector<8x64xf32>
    %86 = vector.extract_strided_slice %85 {offsets = [0, 0], sizes = [8, 32], strides = [1, 1]} : vector<8x64xf32> to vector<8x32xf32>
    %87 = vector.extract_strided_slice %85 {offsets = [0, 32], sizes = [8, 32], strides = [1, 1]} : vector<8x64xf32> to vector<8x32xf32>
    %88 = vector.extract_strided_slice %76 {offsets = [0, 64], sizes = [8, 32], strides = [1, 1]} : vector<8x128xf32> to vector<8x32xf32>
    %89 = vector.extract_strided_slice %77 {offsets = [0, 64], sizes = [8, 32], strides = [1, 1]} : vector<8x128xf32> to vector<8x32xf32>
    %90 = vector.broadcast %12 : vector<1x32xf32> to vector<8x32xf32>
    %91 = arith.addf %89, %90 : vector<8x32xf32>
    %92 = arith.mulf %86, %91 : vector<8x32xf32>
    %93 = arith.addf %88, %92 : vector<8x32xf32>
    %94 = math.tanh %93 : vector<8x32xf32>
    %cst_33 = arith.constant 1.000000e+00 : f32
    %95 = vector.broadcast %cst_33 : f32 to vector<8x32xf32>
    %96 = arith.subf %95, %87 : vector<8x32xf32>
    %97 = arith.mulf %96, %94 : vector<8x32xf32>
    %98 = arith.mulf %87, %69 : vector<8x32xf32>
    %99 = arith.addf %97, %98 : vector<8x32xf32>
    %100 = arith.index_cast %c2_i32 : i32 to index
    %c0_34 = arith.constant 0 : index
    %c0_35 = arith.constant 0 : index
    %101 = vector.load %arg11[%100, %c0_34, %c0_35] : memref<8x8x32xf32, #tpu.memory_space<vmem>>, vector<1x8x32xf32>
    %102 = vector.shape_cast %101 : vector<1x8x32xf32> to vector<8x32xf32>
    %103 = vector.shape_cast %99 : vector<8x32xf32> to vector<1x8x32xf32>
    tpu.vector_store %arg11[%100, %c0_34, %c0_35], %103 {strides = array<i32>} : memref<8x8x32xf32, #tpu.memory_space<vmem>>, vector<1x8x32xf32>,
    %c3_i32 = arith.constant 3 : i32
    %104 = arith.index_cast %c3_i32 : i32 to index
    %c0_36 = arith.constant 0 : index
    %c0_37 = arith.constant 0 : index
    %105 = vector.load %arg10[%104, %c0_36, %c0_37] : memref<8x8x128xf32, #tpu.memory_space<vmem>>, vector<1x8x128xf32>
    %106 = vector.shape_cast %105 : vector<1x8x128xf32> to vector<8x128xf32>
    %cst_38 = arith.constant dense<0.000000e+00> : vector<8x128xf32>
    %107 = tpu.matmul %99, %11, %cst_38 {dimension_numbers = #tpu.dot_dimension_numbers<[1], [0], [0], [1], [0, 0, 1, 1], [], []>} : vector<8x32xf32>, vector<32x128xf32>, vector<8x128xf32> -> vector<8x128xf32>
    %108 = vector.extract_strided_slice %106 {offsets = [0, 0], sizes = [8, 64], strides = [1, 1]} : vector<8x128xf32> to vector<8x64xf32>
    %109 = vector.extract_strided_slice %107 {offsets = [0, 0], sizes = [8, 64], strides = [1, 1]} : vector<8x128xf32> to vector<8x64xf32>
    %110 = arith.addf %108, %109 : vector<8x64xf32>
    %111 = arith.negf %110 : vector<8x64xf32>
    %112 = math.exp %111 : vector<8x64xf32>
    %cst_39 = arith.constant 1.000000e+00 : f32
    %113 = vector.broadcast %cst_39 : f32 to vector<8x64xf32>
    %114 = arith.addf %113, %112 : vector<8x64xf32>
    %115 = arith.divf %113, %114 : vector<8x64xf32>
    %116 = vector.extract_strided_slice %115 {offsets = [0, 0], sizes = [8, 32], strides = [1, 1]} : vector<8x64xf32> to vector<8x32xf32>
    %117 = vector.extract_strided_slice %115 {offsets = [0, 32], sizes = [8, 32], strides = [1, 1]} : vector<8x64xf32> to vector<8x32xf32>
    %118 = vector.extract_strided_slice %106 {offsets = [0, 64], sizes = [8, 32], strides = [1, 1]} : vector<8x128xf32> to vector<8x32xf32>
    %119 = vector.extract_strided_slice %107 {offsets = [0, 64], sizes = [8, 32], strides = [1, 1]} : vector<8x128xf32> to vector<8x32xf32>
    %120 = vector.broadcast %12 : vector<1x32xf32> to vector<8x32xf32>
    %121 = arith.addf %119, %120 : vector<8x32xf32>
    %122 = arith.mulf %116, %121 : vector<8x32xf32>
    %123 = arith.addf %118, %122 : vector<8x32xf32>
    %124 = math.tanh %123 : vector<8x32xf32>
    %cst_40 = arith.constant 1.000000e+00 : f32
    %125 = vector.broadcast %cst_40 : f32 to vector<8x32xf32>
    %126 = arith.subf %125, %117 : vector<8x32xf32>
    %127 = arith.mulf %126, %124 : vector<8x32xf32>
    %128 = arith.mulf %117, %99 : vector<8x32xf32>
    %129 = arith.addf %127, %128 : vector<8x32xf32>
    %130 = arith.index_cast %c3_i32 : i32 to index
    %c0_41 = arith.constant 0 : index
    %c0_42 = arith.constant 0 : index
    %131 = vector.load %arg11[%130, %c0_41, %c0_42] : memref<8x8x32xf32, #tpu.memory_space<vmem>>, vector<1x8x32xf32>
    %132 = vector.shape_cast %131 : vector<1x8x32xf32> to vector<8x32xf32>
    %133 = vector.shape_cast %129 : vector<8x32xf32> to vector<1x8x32xf32>
    tpu.vector_store %arg11[%130, %c0_41, %c0_42], %133 {strides = array<i32>} : memref<8x8x32xf32, #tpu.memory_space<vmem>>, vector<1x8x32xf32>,
    %c4_i32 = arith.constant 4 : i32
    %134 = arith.index_cast %c4_i32 : i32 to index
    %c0_43 = arith.constant 0 : index
    %c0_44 = arith.constant 0 : index
    %135 = vector.load %arg10[%134, %c0_43, %c0_44] : memref<8x8x128xf32, #tpu.memory_space<vmem>>, vector<1x8x128xf32>
    %136 = vector.shape_cast %135 : vector<1x8x128xf32> to vector<8x128xf32>
    %cst_45 = arith.constant dense<0.000000e+00> : vector<8x128xf32>
    %137 = tpu.matmul %129, %11, %cst_45 {dimension_numbers = #tpu.dot_dimension_numbers<[1], [0], [0], [1], [0, 0, 1, 1], [], []>} : vector<8x32xf32>, vector<32x128xf32>, vector<8x128xf32> -> vector<8x128xf32>
    %138 = vector.extract_strided_slice %136 {offsets = [0, 0], sizes = [8, 64], strides = [1, 1]} : vector<8x128xf32> to vector<8x64xf32>
    %139 = vector.extract_strided_slice %137 {offsets = [0, 0], sizes = [8, 64], strides = [1, 1]} : vector<8x128xf32> to vector<8x64xf32>
    %140 = arith.addf %138, %139 : vector<8x64xf32>
    %141 = arith.negf %140 : vector<8x64xf32>
    %142 = math.exp %141 : vector<8x64xf32>
    %cst_46 = arith.constant 1.000000e+00 : f32
    %143 = vector.broadcast %cst_46 : f32 to vector<8x64xf32>
    %144 = arith.addf %143, %142 : vector<8x64xf32>
    %145 = arith.divf %143, %144 : vector<8x64xf32>
    %146 = vector.extract_strided_slice %145 {offsets = [0, 0], sizes = [8, 32], strides = [1, 1]} : vector<8x64xf32> to vector<8x32xf32>
    %147 = vector.extract_strided_slice %145 {offsets = [0, 32], sizes = [8, 32], strides = [1, 1]} : vector<8x64xf32> to vector<8x32xf32>
    %148 = vector.extract_strided_slice %136 {offsets = [0, 64], sizes = [8, 32], strides = [1, 1]} : vector<8x128xf32> to vector<8x32xf32>
    %149 = vector.extract_strided_slice %137 {offsets = [0, 64], sizes = [8, 32], strides = [1, 1]} : vector<8x128xf32> to vector<8x32xf32>
    %150 = vector.broadcast %12 : vector<1x32xf32> to vector<8x32xf32>
    %151 = arith.addf %149, %150 : vector<8x32xf32>
    %152 = arith.mulf %146, %151 : vector<8x32xf32>
    %153 = arith.addf %148, %152 : vector<8x32xf32>
    %154 = math.tanh %153 : vector<8x32xf32>
    %cst_47 = arith.constant 1.000000e+00 : f32
    %155 = vector.broadcast %cst_47 : f32 to vector<8x32xf32>
    %156 = arith.subf %155, %147 : vector<8x32xf32>
    %157 = arith.mulf %156, %154 : vector<8x32xf32>
    %158 = arith.mulf %147, %129 : vector<8x32xf32>
    %159 = arith.addf %157, %158 : vector<8x32xf32>
    %160 = arith.index_cast %c4_i32 : i32 to index
    %c0_48 = arith.constant 0 : index
    %c0_49 = arith.constant 0 : index
    %161 = vector.load %arg11[%160, %c0_48, %c0_49] : memref<8x8x32xf32, #tpu.memory_space<vmem>>, vector<1x8x32xf32>
    %162 = vector.shape_cast %161 : vector<1x8x32xf32> to vector<8x32xf32>
    %163 = vector.shape_cast %159 : vector<8x32xf32> to vector<1x8x32xf32>
    tpu.vector_store %arg11[%160, %c0_48, %c0_49], %163 {strides = array<i32>} : memref<8x8x32xf32, #tpu.memory_space<vmem>>, vector<1x8x32xf32>,
    %c5_i32 = arith.constant 5 : i32
    %164 = arith.index_cast %c5_i32 : i32 to index
    %c0_50 = arith.constant 0 : index
    %c0_51 = arith.constant 0 : index
    %165 = vector.load %arg10[%164, %c0_50, %c0_51] : memref<8x8x128xf32, #tpu.memory_space<vmem>>, vector<1x8x128xf32>
    %166 = vector.shape_cast %165 : vector<1x8x128xf32> to vector<8x128xf32>
    %cst_52 = arith.constant dense<0.000000e+00> : vector<8x128xf32>
    %167 = tpu.matmul %159, %11, %cst_52 {dimension_numbers = #tpu.dot_dimension_numbers<[1], [0], [0], [1], [0, 0, 1, 1], [], []>} : vector<8x32xf32>, vector<32x128xf32>, vector<8x128xf32> -> vector<8x128xf32>
    %168 = vector.extract_strided_slice %166 {offsets = [0, 0], sizes = [8, 64], strides = [1, 1]} : vector<8x128xf32> to vector<8x64xf32>
    %169 = vector.extract_strided_slice %167 {offsets = [0, 0], sizes = [8, 64], strides = [1, 1]} : vector<8x128xf32> to vector<8x64xf32>
    %170 = arith.addf %168, %169 : vector<8x64xf32>
    %171 = arith.negf %170 : vector<8x64xf32>
    %172 = math.exp %171 : vector<8x64xf32>
    %cst_53 = arith.constant 1.000000e+00 : f32
    %173 = vector.broadcast %cst_53 : f32 to vector<8x64xf32>
    %174 = arith.addf %173, %172 : vector<8x64xf32>
    %175 = arith.divf %173, %174 : vector<8x64xf32>
    %176 = vector.extract_strided_slice %175 {offsets = [0, 0], sizes = [8, 32], strides = [1, 1]} : vector<8x64xf32> to vector<8x32xf32>
    %177 = vector.extract_strided_slice %175 {offsets = [0, 32], sizes = [8, 32], strides = [1, 1]} : vector<8x64xf32> to vector<8x32xf32>
    %178 = vector.extract_strided_slice %166 {offsets = [0, 64], sizes = [8, 32], strides = [1, 1]} : vector<8x128xf32> to vector<8x32xf32>
    %179 = vector.extract_strided_slice %167 {offsets = [0, 64], sizes = [8, 32], strides = [1, 1]} : vector<8x128xf32> to vector<8x32xf32>
    %180 = vector.broadcast %12 : vector<1x32xf32> to vector<8x32xf32>
    %181 = arith.addf %179, %180 : vector<8x32xf32>
    %182 = arith.mulf %176, %181 : vector<8x32xf32>
    %183 = arith.addf %178, %182 : vector<8x32xf32>
    %184 = math.tanh %183 : vector<8x32xf32>
    %cst_54 = arith.constant 1.000000e+00 : f32
    %185 = vector.broadcast %cst_54 : f32 to vector<8x32xf32>
    %186 = arith.subf %185, %177 : vector<8x32xf32>
    %187 = arith.mulf %186, %184 : vector<8x32xf32>
    %188 = arith.mulf %177, %159 : vector<8x32xf32>
    %189 = arith.addf %187, %188 : vector<8x32xf32>
    %190 = arith.index_cast %c5_i32 : i32 to index
    %c0_55 = arith.constant 0 : index
    %c0_56 = arith.constant 0 : index
    %191 = vector.load %arg11[%190, %c0_55, %c0_56] : memref<8x8x32xf32, #tpu.memory_space<vmem>>, vector<1x8x32xf32>
    %192 = vector.shape_cast %191 : vector<1x8x32xf32> to vector<8x32xf32>
    %193 = vector.shape_cast %189 : vector<8x32xf32> to vector<1x8x32xf32>
    tpu.vector_store %arg11[%190, %c0_55, %c0_56], %193 {strides = array<i32>} : memref<8x8x32xf32, #tpu.memory_space<vmem>>, vector<1x8x32xf32>,
    %c6_i32 = arith.constant 6 : i32
    %194 = arith.index_cast %c6_i32 : i32 to index
    %c0_57 = arith.constant 0 : index
    %c0_58 = arith.constant 0 : index
    %195 = vector.load %arg10[%194, %c0_57, %c0_58] : memref<8x8x128xf32, #tpu.memory_space<vmem>>, vector<1x8x128xf32>
    %196 = vector.shape_cast %195 : vector<1x8x128xf32> to vector<8x128xf32>
    %cst_59 = arith.constant dense<0.000000e+00> : vector<8x128xf32>
    %197 = tpu.matmul %189, %11, %cst_59 {dimension_numbers = #tpu.dot_dimension_numbers<[1], [0], [0], [1], [0, 0, 1, 1], [], []>} : vector<8x32xf32>, vector<32x128xf32>, vector<8x128xf32> -> vector<8x128xf32>
    %198 = vector.extract_strided_slice %196 {offsets = [0, 0], sizes = [8, 64], strides = [1, 1]} : vector<8x128xf32> to vector<8x64xf32>
    %199 = vector.extract_strided_slice %197 {offsets = [0, 0], sizes = [8, 64], strides = [1, 1]} : vector<8x128xf32> to vector<8x64xf32>
    %200 = arith.addf %198, %199 : vector<8x64xf32>
    %201 = arith.negf %200 : vector<8x64xf32>
    %202 = math.exp %201 : vector<8x64xf32>
    %cst_60 = arith.constant 1.000000e+00 : f32
    %203 = vector.broadcast %cst_60 : f32 to vector<8x64xf32>
    %204 = arith.addf %203, %202 : vector<8x64xf32>
    %205 = arith.divf %203, %204 : vector<8x64xf32>
    %206 = vector.extract_strided_slice %205 {offsets = [0, 0], sizes = [8, 32], strides = [1, 1]} : vector<8x64xf32> to vector<8x32xf32>
    %207 = vector.extract_strided_slice %205 {offsets = [0, 32], sizes = [8, 32], strides = [1, 1]} : vector<8x64xf32> to vector<8x32xf32>
    %208 = vector.extract_strided_slice %196 {offsets = [0, 64], sizes = [8, 32], strides = [1, 1]} : vector<8x128xf32> to vector<8x32xf32>
    %209 = vector.extract_strided_slice %197 {offsets = [0, 64], sizes = [8, 32], strides = [1, 1]} : vector<8x128xf32> to vector<8x32xf32>
    %210 = vector.broadcast %12 : vector<1x32xf32> to vector<8x32xf32>
    %211 = arith.addf %209, %210 : vector<8x32xf32>
    %212 = arith.mulf %206, %211 : vector<8x32xf32>
    %213 = arith.addf %208, %212 : vector<8x32xf32>
    %214 = math.tanh %213 : vector<8x32xf32>
    %cst_61 = arith.constant 1.000000e+00 : f32
    %215 = vector.broadcast %cst_61 : f32 to vector<8x32xf32>
    %216 = arith.subf %215, %207 : vector<8x32xf32>
    %217 = arith.mulf %216, %214 : vector<8x32xf32>
    %218 = arith.mulf %207, %189 : vector<8x32xf32>
    %219 = arith.addf %217, %218 : vector<8x32xf32>
    %220 = arith.index_cast %c6_i32 : i32 to index
    %c0_62 = arith.constant 0 : index
    %c0_63 = arith.constant 0 : index
    %221 = vector.load %arg11[%220, %c0_62, %c0_63] : memref<8x8x32xf32, #tpu.memory_space<vmem>>, vector<1x8x32xf32>
    %222 = vector.shape_cast %221 : vector<1x8x32xf32> to vector<8x32xf32>
    %223 = vector.shape_cast %219 : vector<8x32xf32> to vector<1x8x32xf32>
    tpu.vector_store %arg11[%220, %c0_62, %c0_63], %223 {strides = array<i32>} : memref<8x8x32xf32, #tpu.memory_space<vmem>>, vector<1x8x32xf32>,
    %c7_i32 = arith.constant 7 : i32
    %224 = arith.index_cast %c7_i32 : i32 to index
    %c0_64 = arith.constant 0 : index
    %c0_65 = arith.constant 0 : index
    %225 = vector.load %arg10[%224, %c0_64, %c0_65] : memref<8x8x128xf32, #tpu.memory_space<vmem>>, vector<1x8x128xf32>
    %226 = vector.shape_cast %225 : vector<1x8x128xf32> to vector<8x128xf32>
    %cst_66 = arith.constant dense<0.000000e+00> : vector<8x128xf32>
    %227 = tpu.matmul %219, %11, %cst_66 {dimension_numbers = #tpu.dot_dimension_numbers<[1], [0], [0], [1], [0, 0, 1, 1], [], []>} : vector<8x32xf32>, vector<32x128xf32>, vector<8x128xf32> -> vector<8x128xf32>
    %228 = vector.extract_strided_slice %226 {offsets = [0, 0], sizes = [8, 64], strides = [1, 1]} : vector<8x128xf32> to vector<8x64xf32>
    %229 = vector.extract_strided_slice %227 {offsets = [0, 0], sizes = [8, 64], strides = [1, 1]} : vector<8x128xf32> to vector<8x64xf32>
    %230 = arith.addf %228, %229 : vector<8x64xf32>
    %231 = arith.negf %230 : vector<8x64xf32>
    %232 = math.exp %231 : vector<8x64xf32>
    %cst_67 = arith.constant 1.000000e+00 : f32
    %233 = vector.broadcast %cst_67 : f32 to vector<8x64xf32>
    %234 = arith.addf %233, %232 : vector<8x64xf32>
    %235 = arith.divf %233, %234 : vector<8x64xf32>
    %236 = vector.extract_strided_slice %235 {offsets = [0, 0], sizes = [8, 32], strides = [1, 1]} : vector<8x64xf32> to vector<8x32xf32>
    %237 = vector.extract_strided_slice %235 {offsets = [0, 32], sizes = [8, 32], strides = [1, 1]} : vector<8x64xf32> to vector<8x32xf32>
    %238 = vector.extract_strided_slice %226 {offsets = [0, 64], sizes = [8, 32], strides = [1, 1]} : vector<8x128xf32> to vector<8x32xf32>
    %239 = vector.extract_strided_slice %227 {offsets = [0, 64], sizes = [8, 32], strides = [1, 1]} : vector<8x128xf32> to vector<8x32xf32>
    %240 = vector.broadcast %12 : vector<1x32xf32> to vector<8x32xf32>
    %241 = arith.addf %239, %240 : vector<8x32xf32>
    %242 = arith.mulf %236, %241 : vector<8x32xf32>
    %243 = arith.addf %238, %242 : vector<8x32xf32>
    %244 = math.tanh %243 : vector<8x32xf32>
    %cst_68 = arith.constant 1.000000e+00 : f32
    %245 = vector.broadcast %cst_68 : f32 to vector<8x32xf32>
    %246 = arith.subf %245, %237 : vector<8x32xf32>
    %247 = arith.mulf %246, %244 : vector<8x32xf32>
    %248 = arith.mulf %237, %219 : vector<8x32xf32>
    %249 = arith.addf %247, %248 : vector<8x32xf32>
    %250 = arith.index_cast %c7_i32 : i32 to index
    %c0_69 = arith.constant 0 : index
    %c0_70 = arith.constant 0 : index
    %251 = vector.load %arg11[%250, %c0_69, %c0_70] : memref<8x8x32xf32, #tpu.memory_space<vmem>>, vector<1x8x32xf32>
    %252 = vector.shape_cast %251 : vector<1x8x32xf32> to vector<8x32xf32>
    %253 = vector.shape_cast %249 : vector<8x32xf32> to vector<1x8x32xf32>
    tpu.vector_store %arg11[%250, %c0_69, %c0_70], %253 {strides = array<i32>} : memref<8x8x32xf32, #tpu.memory_space<vmem>>, vector<1x8x32xf32>,
    %c8_i32 = arith.constant 8 : i32
    %c0_71 = arith.constant 0 : index
    %c0_72 = arith.constant 0 : index
    %c0_73 = arith.constant 0 : index
    %254 = vector.load %arg9[%c0_71, %c0_72, %c0_73] : memref<1x8x32xf32, #tpu.memory_space<vmem>>, vector<1x8x32xf32>
    %255 = vector.shape_cast %254 : vector<1x8x32xf32> to vector<8x32xf32>
    %256 = vector.shape_cast %249 : vector<8x32xf32> to vector<1x8x32xf32>
    tpu.vector_store %arg9[%c0_71, %c0_72, %c0_73], %256 {strides = array<i32>} : memref<1x8x32xf32, #tpu.memory_space<vmem>>, vector<1x8x32xf32>,
    %c0_74 = arith.constant 0 : index
    %c0_75 = arith.constant 0 : index
    %c0_76 = arith.constant 0 : index
    %257 = vector.load %arg11[%c0_74, %c0_75, %c0_76] : memref<8x8x32xf32, #tpu.memory_space<vmem>>, vector<8x8x32xf32>
    %258 = vector.shape_cast %257 : vector<8x8x32xf32> to vector<64x32xf32>
    %c0_77 = arith.constant 0 : index
    %c0_78 = arith.constant 0 : index
    %259 = vector.load %arg6[%c0_77, %c0_78] : memref<32x128xf32, #tpu.memory_space<vmem>>, vector<32x128xf32>
    %cst_79 = arith.constant dense<0.000000e+00> : vector<64x128xf32>
    %260 = tpu.matmul %258, %259, %cst_79 {dimension_numbers = #tpu.dot_dimension_numbers<[1], [0], [0], [1], [0, 0, 1, 1], [], []>} : vector<64x32xf32>, vector<32x128xf32>, vector<64x128xf32> -> vector<64x128xf32>
    %c0_80 = arith.constant 0 : index
    %c0_81 = arith.constant 0 : index
    %261 = vector.load %arg7[%c0_80, %c0_81] : memref<1x128xf32, #tpu.memory_space<vmem>>, vector<1x128xf32>
    %262 = vector.broadcast %261 : vector<1x128xf32> to vector<64x128xf32>
    %263 = arith.addf %260, %262 : vector<64x128xf32>
    %264 = vector.shape_cast %263 : vector<64x128xf32> to vector<8x8x128xf32>
    %c0_82 = arith.constant 0 : index
    %c0_83 = arith.constant 0 : index
    %c0_84 = arith.constant 0 : index
    %265 = vector.load %arg8[%c0_82, %c0_83, %c0_84] : memref<8x8x128xf32, #tpu.memory_space<vmem>>, vector<8x8x128xf32>
    tpu.vector_store %arg8[%c0_82, %c0_83, %c0_84], %264 {strides = array<i32>} : memref<8x8x128xf32, #tpu.memory_space<vmem>>, vector<8x8x128xf32>,
    return
  }
  func.func @transform_0(%arg0: i32) -> (i32, i32, i32) {
    %c0_i32 = arith.constant 0 : i32
    %c0_i32_0 = arith.constant 0 : i32
    %c0_i32_1 = arith.constant 0 : i32
    %c0_i32_2 = arith.constant 0 : i32
    return %c0_i32, %c0_i32_0, %c0_i32_1 : i32, i32, i32
  }
  func.func @transform_1(%arg0: i32) -> (i32, i32) {
    %c0_i32 = arith.constant 0 : i32
    %c0_i32_0 = arith.constant 0 : i32
    %c0_i32_1 = arith.constant 0 : i32
    return %c0_i32, %c0_i32_0 : i32, i32
  }
  func.func @transform_2(%arg0: i32) -> (i32, i32) {
    %c0_i32 = arith.constant 0 : i32
    %c0_i32_0 = arith.constant 0 : i32
    %c0_i32_1 = arith.constant 0 : i32
    return %c0_i32, %c0_i32_0 : i32, i32
  }
  func.func @transform_3(%arg0: i32) -> (i32, i32) {
    %c0_i32 = arith.constant 0 : i32
    %c0_i32_0 = arith.constant 0 : i32
    %c0_i32_1 = arith.constant 0 : i32
    return %c0_i32, %c0_i32_0 : i32, i32
  }
  func.func @transform_4(%arg0: i32) -> (i32, i32) {
    %c0_i32 = arith.constant 0 : i32
    %c0_i32_0 = arith.constant 0 : i32
    %c0_i32_1 = arith.constant 0 : i32
    return %c0_i32, %c0_i32_0 : i32, i32
  }
  func.func @transform_5(%arg0: i32) -> (i32, i32) {
    %c0_i32 = arith.constant 0 : i32
    %c0_i32_0 = arith.constant 0 : i32
    %c0_i32_1 = arith.constant 0 : i32
    return %c0_i32, %c0_i32_0 : i32, i32
  }
  func.func @transform_6(%arg0: i32) -> (i32, i32) {
    %c0_i32 = arith.constant 0 : i32
    %c0_i32_0 = arith.constant 0 : i32
    %c0_i32_1 = arith.constant 0 : i32
    return %c0_i32, %c0_i32_0 : i32, i32
  }
  func.func @transform_7(%arg0: i32) -> (i32, i32, i32) {
    %c0_i32 = arith.constant 0 : i32
    %c0_i32_0 = arith.constant 0 : i32
    %c0_i32_1 = arith.constant 0 : i32
    %c0_i32_2 = arith.constant 0 : i32
    return %c0_i32, %c0_i32_0, %c0_i32_1 : i32, i32, i32
  }
  func.func @transform_8(%arg0: i32) -> (i32, i32, i32) {
    %c0_i32 = arith.constant 0 : i32
    %c0_i32_0 = arith.constant 0 : i32
    %c0_i32_1 = arith.constant 0 : i32
    %c0_i32_2 = arith.constant 0 : i32
    return %c0_i32, %c0_i32_0, %c0_i32_1 : i32, i32, i32
  }
}

</mosaic_0001>

<bundles_post_ra>
// kernel: _forward_jit.1
= control target key start
LH: loop header
LB: loop body
LE: loop exit
PB: predicated region body
PF: predicated region fallthrough
CT: control target
= control target key end

     0   :  { %vm55_vm0 = vcmask 261120   ;;  %v1574_v21 = vmov 0.0|0.0   ;;  %vm1575_vm1 = vmmov 0   ;;  %v1576_v26 = vmov 0.0   ;;  %s1577_s13 = smov 96   ;;  %s1883_s1 = inlined_call_operand.vmem [shape: f32[32,128], index: 1, kind: input, shape index: {}]   ;;  %s1884_s0 = inlined_call_operand.vmem [shape: f32[8,8,32], index: 0, kind: input, shape index: {}]   ;;  %s1885_s4 = inlined_call_operand.vmem [shape: f32[1,32], index: 4, kind: input, shape index: {}]   ;;  %s1886_s2 = inlined_call_operand.vmem [shape: f32[32,128], index: 2, kind: input, shape index: {}]   ;;  %s1887_s3 = inlined_call_operand.vmem [shape: f32[1,128], index: 3, kind: input, shape index: {}]   ;;  %s1888_s5 = inlined_call_operand.vmem [shape: f32[32,128], index: 5, kind: input, shape index: {}]   ;;  %s1889_s6 = inlined_call_operand.vmem [shape: f32[1,128], index: 6, kind: input, shape index: {}]   ;;  %s1890_s7 = inlined_call_operand.vmem [shape: f32[8,8,128], index: 7, kind: output, shape index: {0}]   ;;  %s1891_s8 = inlined_call_operand.vmem [shape: f32[1,8,32], index: 8, kind: output, shape index: {1}]  }
   0x1   :  { %v44_v0 = vld [vmem:[%s1883_s1] sm:$0xff]  ;;  %v45_v1 = vld [vmem:[%s1883_s1 + $0x8] sm:$0xff]  ;;  %v46_v2 = vld [vmem:[%s1883_s1 + $0x10] sm:$0xff] }
   0x2   :  { %v1452_v3 = vpack.c.bf16 %v45_v1, %v44_v0  ;;  %v47_v4 = vld [vmem:[%s1883_s1 + $0x18] sm:$0xff]  ;;  %v32_v5 = vld [vmem:[%s1884_s0 + $0x20] sm:$0xff]  ;;  %v33_v9 = vld [vmem:[%s1884_s0 + $0x28] sm:$0xff] }
   0x3   :  { %v1456_v6 = vpack.c.bf16 %v47_v4, %v46_v2  ;;  %v40_v7 = vmax.f32 %v32_v5, 0.0  ;;  %v28_v8 = vld [vmem:[%s1884_s0] sm:$0xff]  ;;  %v29_v11 = vld [vmem:[%s1884_s0 + $0x8] sm:$0xff]  ;;  %v34_v15 = vld [vmem:[%s1884_s0 + $0x30] sm:$0xff]  ;;  %v41_v16 = vmax.f32 %v33_v9, 0.0 }
   0x4   :  { %1516 = vmatprep.subr.bf16.mxu1 %v1452_v3  ;;  %1453 = vmatprep.subr.bf16.mxu0 %v1452_v3  ;;  %v36_v10 = vmax.f32 %v28_v8, 0.0  ;;  %v1236_v12 = vld [vmem:[%s1885_s4] ss:$0 sm:$0xff]  ;;  %v194_v14 = vld [vmem:[%s1886_s2 + $0x8] sm:$0xff]  ;;  %v37_v17 = vmax.f32 %v29_v11, 0.0  ;;  %s1573_s4 = smov 64  }
   0x5   :  { %1518 = vmatpush3.bf16.msra.mxu1 %v1452_v3  ;;  %1455 = vmatpush3.bf16.msra.mxu0 %v1452_v3  ;;  %v193_v13 = vld [vmem:[%s1886_s2] sm:$0xff]  ;;  %v42_v19 = vmax.f32 %v34_v15, 0.0  ;;  %v35_v20 = vld [vmem:[%s1884_s0 + $0x38] sm:$0xff]  ;;  %v195_v22 = vld [vmem:[%s1886_s2 + $0x10] sm:$0xff] }
   0x6   :  { %1517 = vmatprep.subr.bf16.mxu1 %v1456_v6  ;;  %1338 = vmatprep.mubr.msk.f32.mxu1 %vm55_vm0, %v40_v7  ;;  %v1662_v18 = vpack.c.bf16 %v194_v14, %v193_v13  ;;  %v196_v23 = vld [vmem:[%s1886_s2 + $0x18] sm:$0xff]  ;;  %v43_v24 = vmax.f32 %v35_v20, 0.0  ;;  %v1713_v37 = vld [vmem:[%s1887_s3] ss:$0 sm:$0xff]  ;;  %v30_v4 = vld [vmem:[%s1884_s0 + $0x10] sm:$0xff] }
   0x7   :  { %1457 = vmatprep.subr.bf16.mxu0 %v1456_v6  ;;  %1332 = vmatprep.mubr.msk.f32.mxu0 %vm55_vm0, %v36_v10  ;;  %v1679_v25 = vpack.c.bf16 %v196_v23, %v195_v22  ;;  %v31_v5 = vld [vmem:[%s1884_s0 + $0x18] sm:$0xff] }
   0x8   :  { %284 = vrot.lane.b32.xlu0 %v1236_v12, %s1573_s4  ;;  %v39_v7 = vmax.f32 %v31_v5, 0.0 }
   0x9   :  { %1519 = vmatpush3.bf16.msra.mxu1 %v1456_v6  ;;  %1459 = vmatpush3.bf16.msra.mxu0 %v1456_v6  ;;  %v38_v6 = vmax.f32 %v30_v4, 0.0 }
   0xa   :  { %1460 = vmatprep.subr.bf16.mxu1 %v1574_v21  ;;  %1472 = vmatprep.subr.bf16.mxu0 %v1574_v21 }
   0xc   :  { %1339 = vmatmul.mubr.msk.f32.vlgmr.msra.gmra.mrb[0].mxu1 %vm55_vm0, %v41_v16  ;;  %1333 = vmatmul.mubr.msk.f32.vlgmr.msra.gmra.mrb[0].mxu0 %vm55_vm0, %v37_v17 }
   0xd   :  { %1462 = vmatpush3.bf16.msra.mxu1 %v1662_v18  ;;  %1341 = vmatprep.mubr.msk.f32.mxu1 %vm55_vm0, %v42_v19 }
   0xe   :  { %1463 = vmatprep.subr.bf16.mxu1 %v1574_v21  ;;  %1474 = vmatpush3.bf16.msra.mxu0 %v1662_v18 }
   0xf   :  { %1475 = vmatprep.subr.bf16.mxu0 %v1574_v21  ;;  %1335 = vmatprep.mubr.msk.f32.mxu0 %vm55_vm0, %v38_v6 }
  0x10   :  { %1342 = vmatmul.mubr.msk.f32.gmra.mrb[2].mxu1 %vm55_vm0, %v43_v24  ;;  %1336 = vmatmul.mubr.msk.f32.gmra.mrb[2].mxu0 %vm55_vm0, %v39_v7 }
  0x11   :  { %1465 = vmatpush3.bf16.msra.mxu1 %v1679_v25  ;;  %1352 = vmatprep.mubr.msk.f32.mxu1 %vm1575_vm1, %v1576_v26 }
  0x12   :  { %1466 = vmatprep.subr.bf16.mxu1 %v1574_v21  ;;  %1477 = vmatpush3.bf16.msra.mxu0 %v1679_v25 }
  0x13   :  { %1484 = vmatprep.subr.bf16.mxu0 %v1574_v21  ;;  %1374 = vmatprep.mubr.msk.f32.mxu0 %vm1575_vm1, %v1576_v26 }
  0x14   :  { %1353 = vmatmul.mubr.f32.vlgmr.msra.gmra.mrb[4].mxu1 %v1576_v26 }
  0x15   :  { %1468 = vmatpush3.bf16.msra.mxu1 %v1662_v18  ;;  %1363 = vmatprep.mubr.msk.f32.mxu1 %vm1575_vm1, %v1576_v26 }
  0x16   :  { %1469 = vmatprep.subr.bf16.mxu1 %v1574_v21 }
  0x19   :  { %1471 = vmatpush3.bf16.msra.mxu1 %v1679_v25 }
  0x1a   :  { %1478 = vmatprep.subr.bf16.mxu1 %v1574_v21 }
  0x7a   :  { %v1706_v33 = vpop.permute.xlu0 %284 }
  0xdf   :  { %v1698_v27 = vpop.f32.mrb[0].mxu1  ;;  %v1334_v28 = vpop.f32.mrb[0].mxu0 }
  0xe0   :  { %v1700_v29 = vpop.f32.mrb[1].mxu1  ;;  %v146_v30 = vpop.f32.mrb[1].mxu0  ;;  %v152_v58 = vadd.f32 %v1334_v28, %v1713_v37 }
  0xe1   :  { %v147_v38 = vadd.f32 %v1713_v37, %v146_v30  ;;  %v167_v6 = vadd.f32 %v1713_v37, %v1700_v29 }
  0xe3   :  { %v1702_v31 = vpop.f32.mrb[2].mxu1  ;;  %v1337_v14 = vpop.f32.mrb[2].mxu0 }
  0xe4   :  { %v1704_v32 = vpop.f32.mrb[3].mxu1  ;;  %v156_v15 = vpop.f32.mrb[3].mxu0 }
  0xe5   :  { %v157_v22 = vadd.f32 %v1713_v37, %v156_v15 }
  0xe7   :  { %v268_v34 = vpop.f32.mrb[4].mxu1 }
  0xe8   :  { %v287_v35 = vadd.f32 %v1706_v33, %v268_v34  ;;  %v1354_v36 = vpop.f32.mrb[5].mxu1  ;;  %v272_v39 = vadd.f32 %v268_v34, %v147_v38 }
  0xea   :  { %289 = vrot.lane.b32.xlu0 %v287_v35, %s1573_s4  ;;  %v1235_v40 = vmul.f32 -1.442695, %v272_v39 }
  0xec   :  { %1525 = vpow2.f32 %v1235_v40 }
  0xf6   :  { %v1526_v41 = vpop.eup %1525 }
  0xf7   :  { %v276_v42 = vadd.f32 1.0, %v1526_v41 }
  0xf9   :  { %1527 = vrcp.f32 %v276_v42 }
 0x103   :  { %v1528_v43 = vpop.eup %1527 }
 0x104   :  { %v299_v49 = vsub.f32 1.0, %v1528_v43  ;;  %v305_v51 = vmul.f32 0.0, %v1528_v43 }
 0x15c   :  { %v290_v44 = vpop.permute.xlu0 %289 }
 0x15d   :  { %v292_v45 = vmul.f32 %v1528_v43, %v290_v44 }
 0x15f   :  { %294 = vrot.lane.b32.xlu1 %v292_v45, %s1573_s4 }
 0x1d1   :  { %v295_v46 = vpop.permute.xlu1 %294 }
 0x1d2   :  { %v297_v47 = vadd.f32 %v295_v46, %v147_v38 }
 0x1d4   :  { %1529 = vtanh.f32 %v297_v47 }
 0x1de   :  { %v1530_v48 = vpop.eup %1529 }
 0x1df   :  { %301 = vrot.lane.b32.xlu1 %v1530_v48, %s1577_s13 }
 0x251   :  { %v302_v50 = vpop.permute.xlu1 %301 }
 0x252   :  { %v304_v52 = vmul.f32 %v302_v50, %v299_v49  ;;  %v162_v50 = vadd.f32 %v1337_v14, %v1713_v37 }
 0x254   :  { %v306_v53 = vadd.f32 %v305_v51, %v304_v52 }
 0x256   :  { %308 = vrot.lane.b32.xlu0 %v306_v53, %s1577_s13 }
 0x2c8   :  { %v309_v54 = vpop.permute.xlu0 %308 }
 0x2c9   :  { %311 = vst.msk [vmem:[#allocation3] sm:$0xff] %vm55_vm0, %v309_v54  ;;  %1364 = vmatmul.mubr.msk.f32.vlgmr.msra.gmra.mrb[6].mxu1 %vm55_vm0, %v309_v54 }
 0x2ca   :  { %1480 = vmatpush3.bf16.msra.mxu1 %v1662_v18  ;;  %1385 = vmatprep.mubr.msk.f32.mxu1 %vm1575_vm1, %v1576_v26 }
 0x2cb   :  { %1481 = vmatprep.subr.bf16.mxu1 %v1574_v21 }
 0x2ce   :  { %1483 = vmatpush3.bf16.msra.mxu1 %v1679_v25 }
 0x2cf   :  { %1490 = vmatprep.subr.bf16.mxu1 %v1574_v21 }
 0x39c   :  { %v382_v55 = vpop.f32.mrb[6].mxu1 }
 0x39d   :  { %v393_v56 = vadd.f32 %v382_v55, %v1706_v33  ;;  %v1365_v57 = vpop.f32.mrb[7].mxu1  ;;  %v386_v59 = vadd.f32 %v382_v55, %v152_v58 }
 0x39f   :  { %395 = vrot.lane.b32.xlu1 %v393_v56, %s1573_s4  ;;  %v1238_v60 = vmul.f32 -1.442695, %v386_v59 }
 0x3a1   :  { %1531 = vpow2.f32 %v1238_v60 }
 0x3ab   :  { %v1532_v61 = vpop.eup %1531 }
 0x3ac   :  { %v390_v62 = vadd.f32 1.0, %v1532_v61 }
 0x3ae   :  { %1533 = vrcp.f32 %v390_v62 }
 0x3b8   :  { %v1534_v63 = vpop.eup %1533 }
 0x3b9   :  { %v405_v9 = vsub.f32 1.0, %v1534_v63  ;;  %v411_v11 = vmul.f32 %v1534_v63, %v306_v53 }
 0x411   :  { %v396_v0 = vpop.permute.xlu1 %395 }
 0x412   :  { %v398_v1 = vmul.f32 %v1534_v63, %v396_v0 }
 0x414   :  { %400 = vrot.lane.b32.xlu0 %v398_v1, %s1573_s4 }
 0x486   :  { %v401_v2 = vpop.permute.xlu0 %400 }
 0x487   :  { %v403_v3 = vadd.f32 %v401_v2, %v152_v58 }
 0x489   :  { %1535 = vtanh.f32 %v403_v3 }
 0x493   :  { %v1536_v8 = vpop.eup %1535 }
 0x494   :  { %407 = vrot.lane.b32.xlu1 %v1536_v8, %s1577_s13 }
 0x506   :  { %v408_v10 = vpop.permute.xlu1 %407 }
 0x507   :  { %v410_v12 = vmul.f32 %v408_v10, %v405_v9 }
 0x509   :  { %v412_v13 = vadd.f32 %v411_v11, %v410_v12 }
 0x50b   :  { %414 = vrot.lane.b32.xlu0 %v412_v13, %s1577_s13 }
 0x57d   :  { %v415_v16 = vpop.permute.xlu0 %414 }
 0x57e   :  { %418 = vst.msk [vmem:[#allocation3 + $0x8] sm:$0xff] %vm55_vm0, %v415_v16  ;;  %1375 = vmatmul.mubr.msk.f32.vlgmr.msra.gmra.mrb[4].mxu0 %vm55_vm0, %v415_v16 }
 0x57f   :  { %1486 = vmatpush3.bf16.msra.mxu0 %v1662_v18  ;;  %1396 = vmatprep.mubr.msk.f32.mxu0 %vm1575_vm1, %v1576_v26 }
 0x580   :  { %1487 = vmatprep.subr.bf16.mxu0 %v1574_v21 }
 0x583   :  { %1489 = vmatpush3.bf16.msra.mxu0 %v1679_v25 }
 0x584   :  { %1496 = vmatprep.subr.bf16.mxu0 %v1574_v21 }
 0x651   :  { %v489_v17 = vpop.f32.mrb[4].mxu0 }
 0x652   :  { %v500_v19 = vadd.f32 %v489_v17, %v1706_v33  ;;  %v1376_v20 = vpop.f32.mrb[5].mxu0  ;;  %v493_v23 = vadd.f32 %v489_v17, %v157_v22 }
 0x654   :  { %502 = vrot.lane.b32.xlu1 %v500_v19, %s1573_s4  ;;  %v1240_v24 = vmul.f32 -1.442695, %v493_v23 }
 0x656   :  { %1537 = vpow2.f32 %v1240_v24 }
 0x660   :  { %v1538_v28 = vpop.eup %1537 }
 0x661   :  { %v497_v30 = vadd.f32 1.0, %v1538_v28 }
 0x663   :  { %1539 = vrcp.f32 %v497_v30 }
 0x66d   :  { %v1540_v34 = vpop.eup %1539 }
 0x66e   :  { %v512_v41 = vsub.f32 1.0, %v1540_v34  ;;  %v518_v43 = vmul.f32 %v1540_v34, %v412_v13 }
 0x6c6   :  { %v503_v35 = vpop.permute.xlu1 %502 }
 0x6c7   :  { %v505_v36 = vmul.f32 %v1540_v34, %v503_v35  ;;  %v172_v34 = vadd.f32 %v1698_v27, %v1713_v37  ;;  %v1071_v27 = vld [vmem:[%s1888_s5 + $0x8] sm:$0xff] }
 0x6c9   :  { %507 = vrot.lane.b32.xlu0 %v505_v36, %s1573_s4 }
 0x73b   :  { %v508_v38 = vpop.permute.xlu0 %507 }
 0x73c   :  { %v510_v39 = vadd.f32 %v508_v38, %v157_v22 }
 0x73e   :  { %1541 = vtanh.f32 %v510_v39 }
 0x748   :  { %v1542_v40 = vpop.eup %1541 }
 0x749   :  { %514 = vrot.lane.b32.xlu1 %v1542_v40, %s1577_s13 }
 0x7bb   :  { %v515_v42 = vpop.permute.xlu1 %514 }
 0x7bc   :  { %v517_v44 = vmul.f32 %v515_v42, %v512_v41  ;;  %v1070_v41 = vld [vmem:[%s1888_s5] sm:$0xff] }
 0x7bd   :  { %v1508_v42 = vpack.c.bf16 %v1071_v27, %v1070_v41 }
 0x7be   :  { %v519_v45 = vadd.f32 %v518_v43, %v517_v44 }
 0x7c0   :  { %521 = vrot.lane.b32.xlu0 %v519_v45, %s1577_s13 }
 0x832   :  { %v522_v46 = vpop.permute.xlu0 %521 }
 0x833   :  { %525 = vst.msk [vmem:[#allocation3 + $0x10] sm:$0xff] %vm55_vm0, %v522_v46  ;;  %1386 = vmatmul.mubr.msk.f32.vlgmr.msra.gmra.mrb[8].mxu1 %vm55_vm0, %v522_v46 }
 0x834   :  { %1492 = vmatpush3.bf16.msra.mxu1 %v1662_v18  ;;  %1407 = vmatprep.mubr.msk.f32.mxu1 %vm1575_vm1, %v1576_v26 }
 0x835   :  { %1493 = vmatprep.subr.bf16.mxu1 %v1574_v21 }
 0x838   :  { %1495 = vmatpush3.bf16.msra.mxu1 %v1679_v25 }
 0x839   :  { %1502 = vmatprep.subr.bf16.mxu1 %v1574_v21 }
 0x906   :  { %v596_v47 = vpop.f32.mrb[8].mxu1 }
 0x907   :  { %v607_v48 = vadd.f32 %v596_v47, %v1706_v33  ;;  %v1387_v49 = vpop.f32.mrb[9].mxu1  ;;  %v600_v51 = vadd.f32 %v596_v47, %v162_v50 }
 0x908   :  { %v1072_v49 = vld [vmem:[%s1888_s5 + $0x10] sm:$0xff] }
 0x909   :  { %609 = vrot.lane.b32.xlu1 %v607_v48, %s1573_s4  ;;  %v1242_v52 = vmul.f32 -1.442695, %v600_v51 }
 0x90b   :  { %1543 = vpow2.f32 %v1242_v52 }
 0x915   :  { %v1544_v53 = vpop.eup %1543 }
 0x916   :  { %v604_v54 = vadd.f32 1.0, %v1544_v53  ;;  %v1062_v53 = vld [vmem:[#allocation3] sm:$0xff] }
 0x918   :  { %1545 = vrcp.f32 %v604_v54  ;;  %v1063_v54 = vld [vmem:[#allocation3 + $0x8] sm:$0xff] }
 0x922   :  { %v1546_v55 = vpop.eup %1545 }
 0x923   :  { %v619_v61 = vsub.f32 1.0, %v1546_v55  ;;  %v625_v63 = vmul.f32 %v1546_v55, %v519_v45 }
 0x97b   :  { %v610_v56 = vpop.permute.xlu1 %609 }
 0x97c   :  { %v612_v57 = vmul.f32 %v1546_v55, %v610_v56  ;;  %v1064_v55 = vld [vmem:[#allocation3 + $0x10] sm:$0xff] }
 0x97e   :  { %614 = vrot.lane.b32.xlu0 %v612_v57, %s1573_s4 }
 0x9f0   :  { %v615_v58 = vpop.permute.xlu0 %614 }
 0x9f1   :  { %v617_v59 = vadd.f32 %v615_v58, %v162_v50  ;;  %v1073_v50 = vld [vmem:[%s1888_s5 + $0x18] sm:$0xff] }
 0x9f2   :  { %v1512_v51 = vpack.c.bf16 %v1073_v50, %v1072_v49 }
 0x9f3   :  { %1547 = vtanh.f32 %v617_v59 }
 0x9fd   :  { %v1548_v60 = vpop.eup %1547 }
 0x9fe   :  { %621 = vrot.lane.b32.xlu1 %v1548_v60, %s1577_s13 }
 0xa70   :  { %v622_v62 = vpop.permute.xlu1 %621 }
 0xa71   :  { %v624_v0 = vmul.f32 %v622_v62, %v619_v61  ;;  %v1827_v62 = vld [vmem:[%s1889_s6] ss:$0 sm:$0xff] }
 0xa73   :  { %v626_v1 = vadd.f32 %v625_v63, %v624_v0 }
 0xa75   :  { %628 = vrot.lane.b32.xlu0 %v626_v1, %s1577_s13 }
 0xae7   :  { %v629_v2 = vpop.permute.xlu0 %628 }
 0xae8   :  { %632 = vst.msk [vmem:[#allocation3 + $0x18] sm:$0xff] %vm55_vm0, %v629_v2  ;;  %1397 = vmatmul.mubr.msk.f32.vlgmr.msra.gmra.mrb[6].mxu0 %vm55_vm0, %v629_v2 }
 0xae9   :  { %1498 = vmatpush3.bf16.msra.mxu0 %v1662_v18  ;;  %1418 = vmatprep.mubr.msk.f32.mxu0 %vm1575_vm1, %v1576_v26 }
 0xaea   :  { %1499 = vmatprep.subr.bf16.mxu0 %v1574_v21 }
 0xaed   :  { %1501 = vmatpush3.bf16.msra.mxu0 %v1679_v25 }
 0xaee   :  { %1509 = vmatprep.subr.bf16.mxu0 %v1508_v42 }
 0xaef   :  { %v1065_v56 = vld [vmem:[#allocation3 + $0x18] sm:$0xff] }
 0xbbb   :  { %v703_v3 = vpop.f32.mrb[6].mxu0 }
 0xbbc   :  { %v714_v4 = vadd.f32 %v703_v3, %v1706_v33  ;;  %v1398_v5 = vpop.f32.mrb[7].mxu0  ;;  %v707_v7 = vadd.f32 %v703_v3, %v167_v6 }
 0xbbe   :  { %716 = vrot.lane.b32.xlu1 %v714_v4, %s1573_s4  ;;  %v1244_v8 = vmul.f32 -1.442695, %v707_v7 }
 0xbc0   :  { %1549 = vpow2.f32 %v1244_v8 }
 0xbca   :  { %v1550_v9 = vpop.eup %1549 }
 0xbcb   :  { %v711_v10 = vadd.f32 1.0, %v1550_v9 }
 0xbcd   :  { %1551 = vrcp.f32 %v711_v10 }
 0xbd7   :  { %v1552_v11 = vpop.eup %1551 }
 0xbd8   :  { %v726_v17 = vsub.f32 1.0, %v1552_v11  ;;  %v732_v29 = vmul.f32 %v1552_v11, %v626_v1 }
 0xc30   :  { %v717_v12 = vpop.permute.xlu1 %716 }
 0xc31   :  { %v719_v13 = vmul.f32 %v1552_v11, %v717_v12  ;;  %v177_v11 = vadd.f32 %v1713_v37, %v1704_v32 }
 0xc33   :  { %721 = vrot.lane.b32.xlu0 %v719_v13, %s1573_s4 }
 0xca5   :  { %v722_v14 = vpop.permute.xlu0 %721 }
 0xca6   :  { %v724_v15 = vadd.f32 %v722_v14, %v167_v6 }
 0xca8   :  { %1553 = vtanh.f32 %v724_v15 }
 0xcb2   :  { %v1554_v16 = vpop.eup %1553 }
 0xcb3   :  { %728 = vrot.lane.b32.xlu1 %v1554_v16, %s1577_s13 }
 0xd25   :  { %v729_v19 = vpop.permute.xlu1 %728 }
 0xd26   :  { %v731_v20 = vmul.f32 %v729_v19, %v726_v17 }
 0xd28   :  { %v733_v22 = vadd.f32 %v732_v29, %v731_v20 }
 0xd2a   :  { %735 = vrot.lane.b32.xlu0 %v733_v22, %s1577_s13 }
 0xd9c   :  { %v736_v23 = vpop.permute.xlu0 %735 }
 0xd9d   :  { %739 = vst.msk [vmem:[#allocation3 + $0x20] sm:$0xff] %vm55_vm0, %v736_v23  ;;  %1408 = vmatmul.mubr.msk.f32.vlgmr.msra.gmra.mrb[10].mxu1 %vm55_vm0, %v736_v23 }
 0xd9e   :  { %1504 = vmatpush3.bf16.msra.mxu1 %v1662_v18  ;;  %1429 = vmatprep.mubr.msk.f32.mxu1 %vm1575_vm1, %v1576_v26 }
 0xd9f   :  { %1505 = vmatprep.subr.bf16.mxu1 %v1574_v21 }
 0xda2   :  { %1507 = vmatpush3.bf16.msra.mxu1 %v1679_v25 }
 0xda4   :  { %v1066_v57 = vld [vmem:[#allocation3 + $0x20] sm:$0xff] }
 0xe70   :  { %v810_v24 = vpop.f32.mrb[10].mxu1 }
 0xe71   :  { %v821_v28 = vadd.f32 %v810_v24, %v1706_v33  ;;  %v1409_v30 = vpop.f32.mrb[11].mxu1  ;;  %v814_v35 = vadd.f32 %v810_v24, %v172_v34 }
 0xe73   :  { %823 = vrot.lane.b32.xlu1 %v821_v28, %s1573_s4  ;;  %v1246_v36 = vmul.f32 -1.442695, %v814_v35 }
 0xe75   :  { %1555 = vpow2.f32 %v1246_v36 }
 0xe7f   :  { %v1556_v18 = vpop.eup %1555 }
 0xe80   :  { %v818_v38 = vadd.f32 1.0, %v1556_v18 }
 0xe82   :  { %1557 = vrcp.f32 %v818_v38 }
 0xe8c   :  { %v1558_v26 = vpop.eup %1557 }
 0xe8d   :  { %v833_v44 = vsub.f32 1.0, %v1558_v26  ;;  %v839_v46 = vmul.f32 %v1558_v26, %v733_v22 }
 0xee5   :  { %v824_v39 = vpop.permute.xlu1 %823 }
 0xee6   :  { %v826_v21 = vmul.f32 %v1558_v26, %v824_v39  ;;  %v182_v26 = vadd.f32 %v1702_v31, %v1713_v37 }
 0xee8   :  { %828 = vrot.lane.b32.xlu0 %v826_v21, %s1573_s4 }
 0xf5a   :  { %v829_v25 = vpop.permute.xlu0 %828 }
 0xf5b   :  { %v831_v40 = vadd.f32 %v829_v25, %v172_v34 }
 0xf5d   :  { %1559 = vtanh.f32 %v831_v40 }
 0xf67   :  { %v1560_v43 = vpop.eup %1559 }
 0xf68   :  { %835 = vrot.lane.b32.xlu1 %v1560_v43, %s1577_s13 }
 0xfda   :  { %v836_v45 = vpop.permute.xlu1 %835 }
 0xfdb   :  { %v838_v47 = vmul.f32 %v836_v45, %v833_v44 }
 0xfdd   :  { %v1804_v48 = vadd.f32 %v839_v46, %v838_v47 }
 0xfdf   :  { %842 = vrot.lane.b32.xlu0 %v1804_v48, %s1577_s13 }
0x1051   :  { %v843_v52 = vpop.permute.xlu0 %842 }
0x1052   :  { %846 = vst.msk [vmem:[#allocation3 + $0x28] sm:$0xff] %vm55_vm0, %v843_v52  ;;  %1419 = vmatmul.mubr.msk.f32.vlgmr.msra.gmra.mrb[8].mxu0 %vm55_vm0, %v843_v52 }
0x1053   :  { %1511 = vmatpush3.bf16.msra.mxu0 %v1508_v42  ;;  %1440 = vmatprep.mubr.msk.f32.mxu0 %vm55_vm0, %v1062_v53 }
0x1054   :  { %1513 = vmatprep.subr.bf16.mxu0 %v1512_v51 }
0x1057   :  { %1515 = vmatpush3.bf16.msra.mxu0 %v1512_v51 }
0x1059   :  { %v1067_v58 = vld [vmem:[#allocation3 + $0x28] sm:$0xff] }
0x105a   :  { %1441 = vmatmul.mubr.msk.f32.vlgmr.msra.gmra.mrb[10].mxu0 %vm55_vm0, %v1063_v54 }
0x105b   :  { %1443 = vmatprep.mubr.msk.f32.mxu0 %vm55_vm0, %v1064_v55 }
0x105e   :  { %1444 = vmatmul.mubr.msk.f32.gmra.mrb[12].mxu0 %vm55_vm0, %v1065_v56 }
0x105f   :  { %1446 = vmatprep.mubr.msk.f32.mxu0 %vm55_vm0, %v1066_v57 }
0x1062   :  { %1447 = vmatmul.mubr.msk.f32.gmra.mrb[14].mxu0 %vm55_vm0, %v1067_v58 }
0x1125   :  { %v917_v59 = vpop.f32.mrb[8].mxu0 }
0x1126   :  { %v928_v60 = vadd.f32 %v917_v59, %v1706_v33  ;;  %v1420_v61 = vpop.f32.mrb[9].mxu0  ;;  %v921_v12 = vadd.f32 %v917_v59, %v177_v11 }
0x1128   :  { %930 = vrot.lane.b32.xlu1 %v928_v60, %s1573_s4  ;;  %v1248_v13 = vmul.f32 -1.442695, %v921_v12 }
0x112a   :  { %1561 = vpow2.f32 %v1248_v13 }
0x112d   :  { %v1442_v63 = vpop.f32.mrb[10].mxu0 }
0x112e   :  { %v1177_v0 = vadd.f32 %v1442_v63, %v1827_v62  ;;  %v1171_v1 = vpop.f32.mrb[11].mxu0 }
0x112f   :  { %v1172_v2 = vadd.f32 %v1827_v62, %v1171_v1 }
0x1130   :  { %1211 = vst [vmem:[%s1890_s7 + $0x8] sm:$0xff] %v1177_v0 }
0x1131   :  { %1210 = vst [vmem:[%s1890_s7] sm:$0xff] %v1172_v2  ;;  %v1445_v3 = vpop.f32.mrb[12].mxu0 }
0x1132   :  { %v1187_v4 = vadd.f32 %v1445_v3, %v1827_v62  ;;  %v1181_v5 = vpop.f32.mrb[13].mxu0 }
0x1133   :  { %v1182_v6 = vadd.f32 %v1827_v62, %v1181_v5 }
0x1134   :  { %1213 = vst [vmem:[%s1890_s7 + $0x18] sm:$0xff] %v1187_v4  ;;  %v1562_v14 = vpop.eup %1561 }
0x1135   :  { %1212 = vst [vmem:[%s1890_s7 + $0x10] sm:$0xff] %v1182_v6  ;;  %v1448_v7 = vpop.f32.mrb[14].mxu0  ;;  %v925_v15 = vadd.f32 1.0, %v1562_v14 }
0x1136   :  { %v1197_v8 = vadd.f32 %v1448_v7, %v1827_v62  ;;  %v1191_v9 = vpop.f32.mrb[15].mxu0 }
0x1137   :  { %v1192_v10 = vadd.f32 %v1827_v62, %v1191_v9  ;;  %1563 = vrcp.f32 %v925_v15 }
0x1138   :  { %1215 = vst [vmem:[%s1890_s7 + $0x28] sm:$0xff] %v1197_v8 }
0x1139   :  { %1214 = vst [vmem:[%s1890_s7 + $0x20] sm:$0xff] %v1192_v10 }
0x1141   :  { %v1564_v16 = vpop.eup %1563 }
0x1142   :  { %v940_v23 = vsub.f32 1.0, %v1564_v16  ;;  %v946_v32 = vmul.f32 %v1564_v16, %v1804_v48 }
0x119a   :  { %v931_v17 = vpop.permute.xlu1 %930 }
0x119b   :  { %v933_v19 = vmul.f32 %v1564_v16, %v931_v17 }
0x119d   :  { %935 = vrot.lane.b32.xlu0 %v933_v19, %s1573_s4 }
0x120f   :  { %v936_v29 = vpop.permute.xlu0 %935 }
0x1210   :  { %v938_v20 = vadd.f32 %v936_v29, %v177_v11 }
0x1212   :  { %1565 = vtanh.f32 %v938_v20 }
0x121c   :  { %v1566_v22 = vpop.eup %1565 }
0x121d   :  { %942 = vrot.lane.b32.xlu1 %v1566_v22, %s1577_s13 }
0x128f   :  { %v943_v24 = vpop.permute.xlu1 %942 }
0x1290   :  { %v945_v28 = vmul.f32 %v943_v24, %v940_v23 }
0x1292   :  { %v947_v30 = vadd.f32 %v946_v32, %v945_v28 }
0x1294   :  { %949 = vrot.lane.b32.xlu0 %v947_v30, %s1577_s13 }
0x1306   :  { %v950_v34 = vpop.permute.xlu0 %949 }
0x1307   :  { %953 = vst.msk [vmem:[#allocation3 + $0x30] sm:$0xff] %vm55_vm0, %v950_v34  ;;  %1430 = vmatmul.mubr.msk.f32.vlgmr.msra.gmra.mrb[12].mxu1 %vm55_vm0, %v950_v34 }
0x130e   :  { %v1068_v35 = vld [vmem:[#allocation3 + $0x30] sm:$0xff] }
0x130f   :  { %1449 = vmatprep.mubr.msk.f32.mxu0 %vm55_vm0, %v1068_v35 }
0x13da   :  { %v1024_v36 = vpop.f32.mrb[12].mxu1 }
0x13db   :  { %v1035_v18 = vadd.f32 %v1024_v36, %v1706_v33  ;;  %v1431_v38 = vpop.f32.mrb[13].mxu1  ;;  %v1028_v39 = vadd.f32 %v1024_v36, %v182_v26 }
0x13dd   :  { %1037 = vrot.lane.b32.xlu1 %v1035_v18, %s1573_s4  ;;  %v1250_v21 = vmul.f32 -1.442695, %v1028_v39 }
0x13df   :  { %1567 = vpow2.f32 %v1250_v21 }
0x13e9   :  { %v1568_v25 = vpop.eup %1567 }
0x13ea   :  { %v1032_v40 = vadd.f32 1.0, %v1568_v25 }
0x13ec   :  { %1569 = vrcp.f32 %v1032_v40 }
0x13f6   :  { %v1570_v41 = vpop.eup %1569 }
0x13f7   :  { %v1047_v45 = vsub.f32 1.0, %v1570_v41  ;;  %v1053_v31 = vmul.f32 %v1570_v41, %v947_v30 }
0x144f   :  { %v1038_v27 = vpop.permute.xlu1 %1037 }
0x1450   :  { %v1040_v42 = vmul.f32 %v1570_v41, %v1038_v27 }
0x1452   :  { %1042 = vrot.lane.b32.xlu0 %v1040_v42, %s1573_s4 }
0x14c4   :  { %v1043_v43 = vpop.permute.xlu0 %1042 }
0x14c5   :  { %v1045_v44 = vadd.f32 %v1043_v43, %v182_v26 }
0x14c7   :  { %1571 = vtanh.f32 %v1045_v44 }
0x14d1   :  { %v1572_v33 = vpop.eup %1571 }
0x14d2   :  { %1049 = vrot.lane.b32.xlu1 %v1572_v33, %s1577_s13 }
0x1544   :  { %v1050_v46 = vpop.permute.xlu1 %1049 }
0x1545   :  { %v1052_v37 = vmul.f32 %v1050_v46, %v1047_v45 }
0x1547   :  { %v1054_v47 = vadd.f32 %v1053_v31, %v1052_v37 }
0x1549   :  { %1056 = vrot.lane.b32.xlu0 %v1054_v47, %s1577_s13 }
0x15bb   :  { %v1057_v48 = vpop.permute.xlu0 %1056 }
0x15bc   :  { %1060 = vst.msk [vmem:[#allocation3 + $0x38] sm:$0xff] %vm55_vm0, %v1057_v48  ;;  %1061 = vst.msk [vmem:[%s1891_s8] sm:$0xff] %vm55_vm0, %v1057_v48 }
0x15c3   :  { %v1069_v49 = vld [vmem:[#allocation3 + $0x38] sm:$0xff] }
0x15c4   :  { %1450 = vmatmul.mubr.msk.f32.gmra.mrb[16].mxu0 %vm55_vm0, %v1069_v49 }
0x1697   :  { %v1451_v50 = vpop.f32.mrb[16].mxu0 }
0x1698   :  { %v1207_v51 = vadd.f32 %v1451_v50, %v1827_v62  ;;  %v1201_v52 = vpop.f32.mrb[17].mxu0 }
0x1699   :  { %v1202_v53 = vadd.f32 %v1827_v62, %v1201_v52 }
0x169a   :  { %1217 = vst [vmem:[%s1890_s7 + $0x38] sm:$0xff] %v1207_v51 }
0x169b   :  { %1216 = vst [vmem:[%s1890_s7 + $0x30] sm:$0xff] %v1202_v53 }

</bundles_post_ra>
